<compile_context>
chip_gen: v6e
topology: v6e:2x2x1
jax: 0.10.0
libtpu: 0.0.40
codegen_flags: <defaults>
</compile_context>

<pallas_src>
import jax
import jax.numpy as jnp
from jax.experimental import pallas as pl
from jax.experimental.pallas import tpu as pltpu


_LANE = 128
_MIN_TILE_BYTES = 256 << 10   # never shrink tiles below 256 KiB (0.35 us/step overhead)
_TARGET_TILES = 4             # aim for >= 4 tiles: DMA overlap + v7x 2-TC sharding


def _scale_kernel(s_ref, x_ref, o_ref):
    # s_ref: SMEM (1,) float32 -- scalar-prefetched scale = weights[layer_index]
    # x_ref / o_ref: lane-dense (tile_rows, 128) VMEM tiles.
    # Multiply f32 vreg-locally (v5e has no bf16 VALU); exact for f32 inputs.
    o_ref[...] = (x_ref[...].astype(jnp.float32) * s_ref[0]).astype(o_ref.dtype)


def _tile_params():
    """Generation-aware (tile_budget_bytes, vmem_limit_bytes)."""
    try:
        vmem = getattr(pltpu.get_tpu_info(), "vmem_capacity_bytes", None)
    except Exception:  # not on TPU / interpret mode / query unavailable
        vmem = None
    if vmem is None:
        # Unknown chip: stay under the 32 MiB default scoped limit everywhere.
        return 4 << 20, None
    if vmem <= (64 << 20):
        # v7x: 64 MiB physical VMEM per TC, 3.2 TB/s HBM.
        return 4 << 20, 48 << 20
    # v5e / v6e: 128 MiB physical VMEM.
    return 8 << 20, 64 << 20


def _choose_tile_rows(rows, itemsize, budget_bytes):
    """Tile row count (multiple of 8) for a lane-dense (rows, 128) array."""
    row_bytes = _LANE * itemsize
    budget_rows = max(8, (budget_bytes // row_bytes) // 8 * 8)
    min_rows = max(8, (_MIN_TILE_BYTES // row_bytes) // 8 * 8)
    if rows <= min_rows:
        # Too small for multi-tile pipelining to pay off: one full-extent tile
        # (legal even when rows % 8 != 0 because the block equals the full dim).
        return rows
    # Rows per tile if we want ~_TARGET_TILES tiles, rounded up to a multiple
    # of 8, clamped between the minimum tile and the VMEM budget.
    want = ((pl.cdiv(rows, _TARGET_TILES) + 7) // 8) * 8
    return min(budget_rows, max(min_rows, want))


def _scale_2d(x2d, scale, out_dtype):
    rows, lane = x2d.shape
    tile_bytes, vmem_limit = _tile_params()
    tile_rows = _choose_tile_rows(rows, jnp.dtype(x2d.dtype).itemsize, tile_bytes)
    grid = (pl.cdiv(rows, tile_rows),)  # ragged last tile is masked by Pallas
    sem = ("parallel",) if grid[0] > 1 else ("arbitrary",)
    return pl.pallas_call(
        _scale_kernel,
        out_shape=jax.ShapeDtypeStruct((rows, lane), out_dtype),
        grid_spec=pltpu.PrefetchScalarGridSpec(
            num_scalar_prefetch=1,
            grid=grid,
            in_specs=[pl.BlockSpec((tile_rows, lane), lambda i, s: (i, 0))],
            out_specs=pl.BlockSpec((tile_rows, lane), lambda i, s: (i, 0)),
        ),
        compiler_params=pltpu.CompilerParams(
            dimension_semantics=sem,
            vmem_limit_bytes=vmem_limit),
    )(scale, x2d)


class BlockOutputAttention:
    """JAX/Pallas port of the PyTorch BlockOutputAttention module."""

    def __init__(self, num_blocks: int, xla_bypass_bytes: int = 0):
        # Deterministic init, identical to torch.ones(num_blocks) / num_blocks.
        self.num_blocks = num_blocks
        self.weights = jnp.ones((num_blocks,), dtype=jnp.float32) / num_blocks
        # Optional: route tensors smaller than this through a plain fused XLA
        # multiply (custom-call + DMA setup exceeds the data movement for tiny
        # tensors).  Default 0 keeps everything on the Pallas path so the
        # kernel is exercised / stays fusable into larger Pallas pipelines.
        self.xla_bypass_bytes = xla_bypass_bytes

    def __call__(self, block_output: jax.Array, layer_index) -> jax.Array:
        # jit-safe gather of the single scalar weight; passed as one
        # scalar-prefetch arg (lands in SMEM) to the kernel.
        idx = jnp.asarray(layer_index, dtype=jnp.int32)
        scale = jnp.take(self.weights, idx).reshape((1,)).astype(jnp.float32)

        x = block_output
        # Match torch type promotion (`tensor * float32_param`): int / low-prec
        # float inputs produce a float32 output; float32 stays float32.
        out_dtype = jnp.promote_types(x.dtype, self.weights.dtype)

        if x.size == 0:
            return jnp.asarray(x, dtype=out_dtype)

        nbytes = x.size * jnp.dtype(x.dtype).itemsize
        if nbytes <= self.xla_bypass_bytes:
            return x.astype(out_dtype) * scale[0]

        if x.size % _LANE == 0:
            # Lane-dense view: last dim of 128 gives unmasked full-lane stores;
            # the reshape of a contiguous array is free in the wrapper.
            rows = x.size // _LANE
            x2d = x.reshape(rows, _LANE)
            out2d = _scale_2d(x2d, scale, out_dtype)
            return out2d.reshape(x.shape)

        # TODO(synk): ragged (non-multiple-of-128) element counts fall back to a
        # plain fused XLA multiply (already HBM-roofline for an elementwise
        # scale); a masked-tail Pallas kernel would keep it fusable in-pipeline.
        return x.astype(out_dtype) * scale[0]


if __name__ == "__main__":
    key = jax.random.PRNGKey(0)
    k1, k2, k3 = jax.random.split(key, 3)

    num_blocks = 6
    layer_index = 3
    module = BlockOutputAttention(num_blocks)

    # 1) Small NCHW-like block output: single lane-dense tile, grid=(1,).
    x_small = jax.random.normal(k1, (2, 4, 16, 16), dtype=jnp.float32)
    out_small = jax.block_until_ready(module(x_small, layer_index))
    ref_small = x_small * module.weights[layer_index]
    assert out_small.shape == x_small.shape
    assert out_small.dtype == x_small.dtype
    assert jnp.allclose(out_small, ref_small, atol=1e-6, rtol=1e-6)

    # 2) Larger activation (~4 MiB): multi-tile pipelined / "parallel" path.
    x_big = jax.random.normal(k2, (2, 512, 1024), dtype=jnp.float32)
    out_big = jax.block_until_ready(module(x_big, 1))
    ref_big = x_big * module.weights[1]
    assert jnp.allclose(out_big, ref_big, atol=1e-6, rtol=1e-6)

    # 3) Ragged (non-multiple-of-128) shape exercises the XLA fallback.
    x_rag = jax.random.normal(k3, (3, 5, 7), dtype=jnp.float32)
    out_rag = jax.block_until_ready(module(x_rag, 5))
    ref_rag = x_rag * module.weights[5]
    assert jnp.allclose(out_rag, ref_rag, atol=1e-6, rtol=1e-6)

    print("KERNEL_OK")
</pallas_src>

<mosaic_0001>
module attributes {stable_mosaic.version = 11 : i64} {
  func.func @_scale_kernel(%arg0: i32, %arg1: memref<1xf32, #tpu.memory_space<smem>>, %arg2: memref<16x128xf32, #tpu.memory_space<vmem>>, %arg3: memref<16x128xf32, #tpu.memory_space<vmem>>) attributes {dimension_semantics = [#tpu.dimension_semantics<arbitrary>], iteration_bounds = array<i64: 1>, scalar_prefetch = 1 : i64, scratch_operands = 0 : i64, tpu.core_type = #tpu.core_type<tc>, window_params = [{transform_indices = @transform_0, window_bounds = array<i64: 16, 128>}, {transform_indices = @transform_1, window_bounds = array<i64: 16, 128>}]} {
    %c0 = arith.constant 0 : index
    %c0_0 = arith.constant 0 : index
    %0 = vector.load %arg2[%c0, %c0_0] : memref<16x128xf32, #tpu.memory_space<vmem>>, vector<16x128xf32>
    %c0_1 = arith.constant 0 : index
    %1 = memref.load %arg1[%c0_1] : memref<1xf32, #tpu.memory_space<smem>>
    %2 = vector.broadcast %1 : f32 to vector<16x128xf32>
    %3 = arith.mulf %0, %2 : vector<16x128xf32>
    %c0_2 = arith.constant 0 : index
    %c0_3 = arith.constant 0 : index
    %4 = vector.load %arg3[%c0_2, %c0_3] : memref<16x128xf32, #tpu.memory_space<vmem>>, vector<16x128xf32>
    tpu.vector_store %arg3[%c0_2, %c0_3], %3 {strides = array<i32>} : memref<16x128xf32, #tpu.memory_space<vmem>>, vector<16x128xf32>,
    return
  }
  func.func @transform_0(%arg0: i32, %arg1: memref<1xf32, #tpu.memory_space<smem>>) -> (i32, i32) {
    %c0_i32 = arith.constant 0 : i32
    %c0_i32_0 = arith.constant 0 : i32
    return %arg0, %c0_i32 : i32, i32
  }
  func.func @transform_1(%arg0: i32, %arg1: memref<1xf32, #tpu.memory_space<smem>>) -> (i32, i32) {
    %c0_i32 = arith.constant 0 : i32
    %c0_i32_0 = arith.constant 0 : i32
    return %arg0, %c0_i32 : i32, i32
  }
}

</mosaic_0001>

<bundles_post_ra>
// kernel: tpu_custom_call.1
= control target key start
LH: loop header
LB: loop body
LE: loop exit
PB: predicated region body
PF: predicated region fallthrough
CT: control target
= control target key end

     0   :  { %8 = vsyncpa [#allocation5], 0  ;;  %s126_s0 = inlined_call_operand.<no memory space> [shape: f32[1], index: 0, kind: input, shape index: {}]   ;;  %s127_s1 = inlined_call_operand.hbm [shape: f32[16,128], index: 1, kind: input, shape index: {}]   ;;  %s128_s2 = inlined_call_operand.hbm [shape: f32[16,128], index: 2, kind: output, shape index: {}]  }
   0x1   :  { %9 = vsyncpa [#allocation6], 0  ;;  %s98_s9 = smov [#allocation4]  }
   0x2   :  { %s15_s10 = sshll.u32 %s98_s9, 4  ;;  %s16_s10 = int_to_ptr.vmem [resolvable:$true] %s15_s10 }
   0x3   :  { %s62_s11 = scalar_lea.vmem %s16_s10, 256  ;;  %p67_p1 = scmp.lt.s32.totalorder %s16_s10, %s16_s10 }
   0x4   :  { %p63_p0 = scmp.ne.s32.totalorder %s16_s10, %s62_s11  ;;  %p68_p2 = scmp.lt.s32.totalorder %s62_s11, %s62_s11 }
   0x6   :  { %p69_p3 = por %p68_p2, %p67_p1 }
   0x8   :  { %p70_p4 = pnand %p69_p3, %p63_p0 }
   0xa   :  { %73 = shalt.err (!%p70_p4)
}
   0xb   :  { %s99_s12 = smov 128   ;;  %s100_s13 = smov 8  }
   0xc   :  { %21 = dma.hbm_to_vmem [thread:$0]  %s127_s1, 256, %s16_s10, [#allocation5], %s99_s12, %s99_s12, %s100_s13  }
   0xd   :  { %94 = dma.done.wait [#allocation5], 256  }
   0xe   :  { %95 = vsyncadd [#allocation5], 4294967040  ;;  %v28_v0 = vstv %s126_s0  ;;  %s101_s18 = smov [#allocation7]   ;;  %v25_v1 = vld [vmem:[#allocation4] sm:$0xff]  ;;  %v26_v2 = vld [vmem:[#allocation4 + $0x8] sm:$0xff] }
   0xf   :  { %s38_s19 = sshll.u32 %s101_s18, 4  ;;  %v29_v3 = vmul.f32 %v28_v0, %v25_v1  ;;  %v30_v4 = vmul.f32 %v28_v0, %v26_v2  ;;  %s39_s19 = int_to_ptr.vmem [resolvable:$true] %s38_s19 }
  0x10   :  { %s74_s20 = scalar_lea.vmem %s39_s19, 256  ;;  %p79_p6 = scmp.lt.s32.totalorder %s39_s19, %s39_s19 }
  0x11   :  { %31 = vst [vmem:[#allocation7] sm:$0xff] %v29_v3  ;;  %32 = vst [vmem:[#allocation7 + $0x8] sm:$0xff] %v30_v4  ;;  %p75_p5 = scmp.ne.s32.totalorder %s39_s19, %s74_s20  ;;  %p80_p7 = scmp.lt.s32.totalorder %s74_s20, %s74_s20 }
  0x13   :  { %p81_p8 = por %p80_p7, %p79_p6 }
  0x15   :  { %p82_p9 = pnand %p81_p8, %p75_p5 }
  0x17   :  { %85 = shalt.err (!%p82_p9)
}
  0x18   :  { %44 = dma.vmem_to_hbm [thread:$0]  %s39_s19, 256, %s128_s2, [#allocation6], %s99_s12, %s99_s12, %s100_s13  }
  0x19   :  { %96 = dma.done.wait [#allocation6], 256  }
  0x1a   :  { %97 = vsyncadd [#allocation6], 4294967040 }
  0x1b   :  { %48 = vsyncpa [#allocation5], 1 }
  0x1c   :  { %49 = vsyncpa [#allocation6], 1 }

</bundles_post_ra>
